<compile_context>
chip_gen: v6e
topology: v6e:2x2x1
jax: 0.10.0
libtpu: 0.0.40
codegen_flags: <defaults>
</compile_context>

<pallas_src>
import jax
import jax.numpy as jnp
from jax.experimental import pallas as pl
from jax.experimental.pallas import tpu as pltpu


LANE = 128      # lane width: output columns padded to a multiple of this
SUBLANE = 8     # f32 sublane: batch tile and layer-1 contraction dim aligned to this


def _round_up(x, m):
    return ((x + m - 1) // m) * m


def _cdiv(a, b):
    return (a + b - 1) // b


def _default_min_grid():
    """Best-effort: chips that expose 2 TensorCores behind one device want an even grid."""
    try:
        kind = jax.devices()[0].device_kind.lower()
        if any(tag in kind for tag in ("v4", "v5p", "v7")):
            return 2
    except Exception:
        pass
    return 1


def mlp_kernel(x_ref, w1_ref, b1_ref, w2_ref, b2_ref, o_ref):
    # Layer 1 on the MXU: contraction dim pre-padded to 8 (padded cols of x and w1 are zero).
    h = jnp.dot(x_ref[...], w1_ref[...], preferred_element_type=jnp.float32) + b1_ref[...]
    h = jnp.maximum(h, 0.0)                                  # (TB, H) f32

    # Layer 2 on the MXU: bf16 inputs (MXU-native), f32 accumulation, f32 bias,
    # lane-dense (padded-to-128) output columns -> full `vst` stores.
    y = jnp.dot(h.astype(jnp.bfloat16), w2_ref[...],
                preferred_element_type=jnp.float32) + b2_ref[...]
    o_ref[...] = y.astype(o_ref.dtype)


def prepare_params(w1, b1, w2, b2):
    """One-time conversion of Net parameters to kernel layout (call OUTSIDE the RL hot loop).

    w1: (obs_size, hidden)   f32 (transposed vs. PyTorch Linear weight)
    b1: (1, hidden)          f32
    w2: (hidden, n_actions)  f32 (transposed vs. PyTorch Linear weight)
    b2: (1, n_actions)       f32
    """
    obs, H = w1.shape
    n_actions = w2.shape[1]
    obs_pad = _round_up(max(obs, SUBLANE), SUBLANE)
    n_pad = _round_up(max(n_actions, LANE), LANE)

    w1p = jnp.zeros((obs_pad, H), jnp.float32).at[:obs, :].set(w1.astype(jnp.float32))
    b1p = jnp.asarray(b1, jnp.float32).reshape(1, H)
    w2p = jnp.zeros((H, n_pad), jnp.bfloat16).at[:, :n_actions].set(w2.astype(jnp.bfloat16))
    b2p = jnp.zeros((1, n_pad), jnp.float32).at[:, :n_actions].set(b2.astype(jnp.float32))
    return dict(w1=w1p, b1=b1p, w2=w2p, b2=b2p,
                obs_size=obs, obs_pad=obs_pad, hidden=H,
                n_actions=n_actions, n_pad=n_pad)


def net_forward(x, params, *, block_b=512, min_grid=None):
    """Forward pass of Net.  x: (B, obs_size) f32 -> (B, n_actions) f32 logits."""
    if min_grid is None:
        min_grid = _default_min_grid()

    B, obs = x.shape
    assert obs == params["obs_size"]
    obs_pad = params["obs_pad"]
    H = params["hidden"]
    n_pad = params["n_pad"]
    n_actions = params["n_actions"]

    # Adaptive batch tiling: few grid steps (overhead-bound kernel), TB sublane-aligned,
    # padding waste < one sublane group; min_grid keeps an even grid for 2-TC chips.
    num_tiles = max(min_grid, _cdiv(B, block_b))
    TB = _round_up(_cdiv(B, num_tiles), SUBLANE)
    B_pad = num_tiles * TB

    # Single pad op on the hot path: batch rows to B_pad, obs columns to obs_pad (zeros).
    x = jnp.pad(x.astype(jnp.float32), ((0, B_pad - B), (0, obs_pad - obs)))

    out = pl.pallas_call(
        mlp_kernel,
        out_shape=jax.ShapeDtypeStruct((B_pad, n_pad), jnp.float32),
        grid=(num_tiles,),
        in_specs=[
            pl.BlockSpec((TB, obs_pad), lambda i: (i, 0)),     # x: tiled over batch
            pl.BlockSpec((obs_pad, H), lambda i: (0, 0)),      # w1 (padded): VMEM-resident
            pl.BlockSpec((1, H), lambda i: (0, 0)),            # b1: resident
            pl.BlockSpec((H, n_pad), lambda i: (0, 0)),        # w2 (padded, bf16): resident
            pl.BlockSpec((1, n_pad), lambda i: (0, 0)),        # b2 (padded): resident
        ],
        out_specs=pl.BlockSpec((TB, n_pad), lambda i: (i, 0)),
        compiler_params=pltpu.CompilerParams(
            dimension_semantics=("parallel",),                 # shard batch tiles across TCs
        ),
    )(x, params["w1"], params["b1"], params["w2"], params["b2"])

    return out[:B, :n_actions]


def init_linear_params(key, in_features, out_features):
    """Deterministic init mimicking torch.nn.Linear (uniform +/- 1/sqrt(fan_in))."""
    kw, kb = jax.random.split(key)
    bound = 1.0 / jnp.sqrt(jnp.float32(in_features))
    # Stored as (in, out) so the kernel computes x @ W directly.
    w = jax.random.uniform(kw, (in_features, out_features), jnp.float32, -bound, bound)
    b = jax.random.uniform(kb, (1, out_features), jnp.float32, -bound, bound)
    return w, b


if __name__ == "__main__":
    # CartPole cross-entropy setup: obs=4, hidden=128, actions=2.
    obs_size, hidden_size, n_actions = 4, 128, 2

    key = jax.random.PRNGKey(0)
    kx, k1, k2, kx2 = jax.random.split(key, 4)

    w1, b1 = init_linear_params(k1, obs_size, hidden_size)
    w2, b2 = init_linear_params(k2, hidden_size, n_actions)

    # One-time parameter preparation (padding + bf16 cast) outside the hot path.
    params = prepare_params(w1, b1, w2, b2)

    def ref_forward(xs):
        return jnp.maximum(xs @ w1 + b1, 0.0) @ w2 + b2

    # Amortized batch (multiple env rollouts batched together) -> exercises the batch grid.
    batch = 256
    x = jax.random.normal(kx, (batch, obs_size), jnp.float32)
    out = jax.block_until_ready(net_forward(x, params))
    assert out.shape == (batch, n_actions)
    # Layer-2 runs with bf16 MXU inputs -> compare against f32 reference with bf16-level tolerance.
    assert jnp.allclose(out, ref_forward(x), atol=2e-2, rtol=2e-2)

    # Small / non-multiple-of-tile batch -> exercises the adaptive padding path.
    x_small = jax.random.normal(kx2, (7, obs_size), jnp.float32)
    out_small = jax.block_until_ready(net_forward(x_small, params))
    assert out_small.shape == (7, n_actions)
    assert jnp.allclose(out_small, ref_forward(x_small), atol=2e-2, rtol=2e-2)

    print("KERNEL_OK")
</pallas_src>

<mosaic_0001>
module attributes {stable_mosaic.version = 11 : i64} {
  func.func @mlp_kernel(%arg0: i32, %arg1: memref<256x8xf32, #tpu.memory_space<vmem>>, %arg2: memref<8x128xf32, #tpu.memory_space<vmem>>, %arg3: memref<1x128xf32, #tpu.memory_space<vmem>>, %arg4: memref<128x128xbf16, #tpu.memory_space<vmem>>, %arg5: memref<1x128xf32, #tpu.memory_space<vmem>>, %arg6: memref<256x128xf32, #tpu.memory_space<vmem>>) attributes {dimension_semantics = [#tpu.dimension_semantics<parallel>], iteration_bounds = array<i64: 1>, scalar_prefetch = 0 : i64, scratch_operands = 0 : i64, tpu.core_type = #tpu.core_type<tc>, window_params = [{transform_indices = @transform_0, window_bounds = array<i64: 256, 8>}, {pipeline_mode = #tpu.pipeline_mode<synchronous>, transform_indices = @transform_1, window_bounds = array<i64: 8, 128>}, {pipeline_mode = #tpu.pipeline_mode<synchronous>, transform_indices = @transform_2, window_bounds = array<i64: 1, 128>}, {pipeline_mode = #tpu.pipeline_mode<synchronous>, transform_indices = @transform_3, window_bounds = array<i64: 128, 128>}, {pipeline_mode = #tpu.pipeline_mode<synchronous>, transform_indices = @transform_4, window_bounds = array<i64: 1, 128>}, {transform_indices = @transform_5, window_bounds = array<i64: 256, 128>}]} {
    %c0 = arith.constant 0 : index
    %c0_0 = arith.constant 0 : index
    %0 = vector.load %arg1[%c0, %c0_0] : memref<256x8xf32, #tpu.memory_space<vmem>>, vector<256x8xf32>
    %c0_1 = arith.constant 0 : index
    %c0_2 = arith.constant 0 : index
    %1 = vector.load %arg2[%c0_1, %c0_2] : memref<8x128xf32, #tpu.memory_space<vmem>>, vector<8x128xf32>
    %cst = arith.constant dense<0.000000e+00> : vector<256x128xf32>
    %2 = tpu.matmul %0, %1, %cst {dimension_numbers = #tpu.dot_dimension_numbers<[1], [0], [0], [1], [0, 0, 1, 1], [], []>} : vector<256x8xf32>, vector<8x128xf32>, vector<256x128xf32> -> vector<256x128xf32>
    %c0_3 = arith.constant 0 : index
    %c0_4 = arith.constant 0 : index
    %3 = vector.load %arg3[%c0_3, %c0_4] : memref<1x128xf32, #tpu.memory_space<vmem>>, vector<1x128xf32>
    %4 = vector.broadcast %3 : vector<1x128xf32> to vector<256x128xf32>
    %5 = arith.addf %2, %4 : vector<256x128xf32>
    %cst_5 = arith.constant 0.000000e+00 : f32
    %6 = vector.broadcast %cst_5 : f32 to vector<256x128xf32>
    %7 = arith.maximumf %5, %6 : vector<256x128xf32>
    %8 = arith.truncf %7 : vector<256x128xf32> to vector<256x128xbf16>
    %c0_6 = arith.constant 0 : index
    %c0_7 = arith.constant 0 : index
    %9 = vector.load %arg4[%c0_6, %c0_7] : memref<128x128xbf16, #tpu.memory_space<vmem>>, vector<128x128xbf16>
    %cst_8 = arith.constant dense<0.000000e+00> : vector<256x128xf32>
    %10 = tpu.matmul %8, %9, %cst_8 {dimension_numbers = #tpu.dot_dimension_numbers<[1], [0], [0], [1], [0, 0, 1, 1], [], []>} : vector<256x128xbf16>, vector<128x128xbf16>, vector<256x128xf32> -> vector<256x128xf32>
    %c0_9 = arith.constant 0 : index
    %c0_10 = arith.constant 0 : index
    %11 = vector.load %arg5[%c0_9, %c0_10] : memref<1x128xf32, #tpu.memory_space<vmem>>, vector<1x128xf32>
    %12 = vector.broadcast %11 : vector<1x128xf32> to vector<256x128xf32>
    %13 = arith.addf %10, %12 : vector<256x128xf32>
    %c0_11 = arith.constant 0 : index
    %c0_12 = arith.constant 0 : index
    %14 = vector.load %arg6[%c0_11, %c0_12] : memref<256x128xf32, #tpu.memory_space<vmem>>, vector<256x128xf32>
    tpu.vector_store %arg6[%c0_11, %c0_12], %13 {strides = array<i32>} : memref<256x128xf32, #tpu.memory_space<vmem>>, vector<256x128xf32>,
    return
  }
  func.func @transform_0(%arg0: i32) -> (i32, i32) {
    %c0_i32 = arith.constant 0 : i32
    %c0_i32_0 = arith.constant 0 : i32
    return %arg0, %c0_i32 : i32, i32
  }
  func.func @transform_1(%arg0: i32) -> (i32, i32) {
    %c0_i32 = arith.constant 0 : i32
    %c0_i32_0 = arith.constant 0 : i32
    %c0_i32_1 = arith.constant 0 : i32
    return %c0_i32, %c0_i32_0 : i32, i32
  }
  func.func @transform_2(%arg0: i32) -> (i32, i32) {
    %c0_i32 = arith.constant 0 : i32
    %c0_i32_0 = arith.constant 0 : i32
    %c0_i32_1 = arith.constant 0 : i32
    return %c0_i32, %c0_i32_0 : i32, i32
  }
  func.func @transform_3(%arg0: i32) -> (i32, i32) {
    %c0_i32 = arith.constant 0 : i32
    %c0_i32_0 = arith.constant 0 : i32
    %c0_i32_1 = arith.constant 0 : i32
    return %c0_i32, %c0_i32_0 : i32, i32
  }
  func.func @transform_4(%arg0: i32) -> (i32, i32) {
    %c0_i32 = arith.constant 0 : i32
    %c0_i32_0 = arith.constant 0 : i32
    %c0_i32_1 = arith.constant 0 : i32
    return %c0_i32, %c0_i32_0 : i32, i32
  }
  func.func @transform_5(%arg0: i32) -> (i32, i32) {
    %c0_i32 = arith.constant 0 : i32
    %c0_i32_0 = arith.constant 0 : i32
    return %arg0, %c0_i32 : i32, i32
  }
}

</mosaic_0001>

<bundles_post_ra>
// kernel: tpu_custom_call.1
= control target key start
LH: loop header
LB: loop body
LE: loop exit
PB: predicated region body
PF: predicated region fallthrough
CT: control target
= control target key end

     0   :  { %vm62_vm0 = vcmask 64512   ;;  %s1223_s0 = inlined_call_operand.vmem [shape: f32[256,8], index: 0, kind: input, shape index: {}]   ;;  %s1224_s1 = inlined_call_operand.vmem [shape: f32[8,128], index: 1, kind: input, shape index: {}]   ;;  %s1225_s2 = inlined_call_operand.vmem [shape: f32[1,128], index: 2, kind: input, shape index: {}]   ;;  %s1226_s3 = inlined_call_operand.vmem [shape: bf16[128,128], index: 3, kind: input, shape index: {}]   ;;  %s1227_s4 = inlined_call_operand.vmem [shape: f32[1,128], index: 4, kind: input, shape index: {}]   ;;  %s1228_s5 = inlined_call_operand.hbm [shape: f32[256,128], index: 5, kind: output, shape index: {}]  }
   0x1   :  { %v54_v0 = vld [vmem:[%s1224_s1] sm:$0xff]  ;;  %v23_v2 = vld [vmem:[%s1223_s0 + $0x8] sm:$0xff]  ;;  %v24_v3 = vld [vmem:[%s1223_s0 + $0x10] sm:$0xff] }
   0x2   :  { %v22_v1 = vld [vmem:[%s1223_s0] sm:$0xff]  ;;  %811 = vmatprep.subr.mxu0 %v54_v0  ;;  %v25_v4 = vld [vmem:[%s1223_s0 + $0x18] sm:$0xff]  ;;  %v27_v6 = vld [vmem:[%s1223_s0 + $0x28] sm:$0xff] }
   0x3   :  { %813 = vmatprep.mubr.msk.f32.mxu0 %vm62_vm0, %v22_v1  ;;  %812 = vmatpush3.msra.mxu0 %v54_v0  ;;  %v26_v5 = vld [vmem:[%s1223_s0 + $0x20] sm:$0xff]  ;;  %v28_v7 = vld [vmem:[%s1223_s0 + $0x30] sm:$0xff]  ;;  %v29_v8 = vld [vmem:[%s1223_s0 + $0x38] sm:$0xff] }
   0x4   :  { %814 = vmatmul.mubr.msk.f32.vlgmr.msra.gmra.mxu0 %vm62_vm0, %v23_v2  ;;  %v928_v9 = vld [vmem:[%s1226_s3 + $0x38] sm:$0xff]   ;;  %v929_v10 = vld [vmem:[%s1226_s3 + $0x30] sm:$0xff]   ;;  %v30_v11 = vld [vmem:[%s1223_s0 + $0x40] sm:$0xff] }
   0x5   :  { %816 = vmatprep.mubr.msk.f32.mxu0 %vm62_vm0, %v24_v3  ;;  %861 = vmatprep.subr.bf16.mxu0 %v928_v9  ;;  %v31_v12 = vld [vmem:[%s1223_s0 + $0x48] sm:$0xff]  ;;  %v32_v13 = vld [vmem:[%s1223_s0 + $0x50] sm:$0xff] }
   0x6   :  { %909 = vmatprep.subr.bf16.mxu1 %v928_v9  ;;  %862 = vmatpush3.bf16.msra.mxu0 %v928_v9  ;;  %v930_v14 = vld [vmem:[%s1226_s3 + $0x28] sm:$0xff]  }
   0x7   :  { %917 = vmatpush3.bf16.msra.mxu1 %v928_v9  ;;  %863 = vmatprep.subr.bf16.mxu0 %v929_v10 }
   0x8   :  { %817 = vmatmul.mubr.msk.f32.gmra.mxu0 %vm62_vm0, %v25_v4  ;;  %910 = vmatprep.subr.bf16.mxu1 %v929_v10 }
   0x9   :  { %819 = vmatprep.mubr.msk.f32.mxu0 %vm62_vm0, %v26_v5 }
   0xa   :  { %864 = vmatpush3.bf16.msra.mxu0 %v929_v10 }
   0xb   :  { %918 = vmatpush3.bf16.msra.mxu1 %v929_v10 }
   0xc   :  { %820 = vmatmul.mubr.msk.f32.gmra.mxu0 %vm62_vm0, %v27_v6 }
   0xd   :  { %822 = vmatprep.mubr.msk.f32.mxu0 %vm62_vm0, %v28_v7 }
  0x10   :  { %823 = vmatmul.mubr.msk.f32.gmra.mxu0 %vm62_vm0, %v29_v8 }
  0x11   :  { %825 = vmatprep.mubr.msk.f32.mxu0 %vm62_vm0, %v30_v11 }
  0x12   :  { %10 = vsyncpa [#allocation3], 0  ;;  %865 = vmatprep.subr.bf16.mxu0 %v930_v14  ;;  %v931_v15 = vld [vmem:[%s1226_s3 + $0x20] sm:$0xff]   ;;  %v33_v16 = vld [vmem:[%s1223_s0 + $0x58] sm:$0xff]  ;;  %911 = vmatprep.subr.bf16.mxu1 %v930_v14 }
  0x13   :  { %v34_v17 = vld [vmem:[%s1223_s0 + $0x60] sm:$0xff]  ;;  %866 = vmatpush3.bf16.msra.mxu0 %v930_v14  ;;  %919 = vmatpush3.bf16.msra.mxu1 %v930_v14  ;;  %v932_v18 = vld [vmem:[%s1226_s3 + $0x18] sm:$0xff]   ;;  %v35_v19 = vld [vmem:[%s1223_s0 + $0x68] sm:$0xff] }
  0x14   :  { %826 = vmatmul.mubr.msk.f32.gmra.mxu0 %vm62_vm0, %v31_v12  ;;  %867 = vmatprep.subr.bf16.mxu0 %v931_v15  ;;  %v36_v20 = vld [vmem:[%s1223_s0 + $0x70] sm:$0xff]  ;;  %v37_v21 = vld [vmem:[%s1223_s0 + $0x78] sm:$0xff]  ;;  %v38_v22 = vld [vmem:[%s1223_s0 + $0x80] sm:$0xff] }
  0x15   :  { %828 = vmatprep.mubr.msk.f32.mxu0 %vm62_vm0, %v32_v13  ;;  %912 = vmatprep.subr.bf16.mxu1 %v931_v15  ;;  %v39_v23 = vld [vmem:[%s1223_s0 + $0x88] sm:$0xff]  ;;  %v40_v24 = vld [vmem:[%s1223_s0 + $0x90] sm:$0xff]  ;;  %v41_v25 = vld [vmem:[%s1223_s0 + $0x98] sm:$0xff] }
  0x16   :  { %v42_v26 = vld [vmem:[%s1223_s0 + $0xa0] sm:$0xff]  ;;  %v43_v27 = vld [vmem:[%s1223_s0 + $0xa8] sm:$0xff]  ;;  %v44_v28 = vld [vmem:[%s1223_s0 + $0xb0] sm:$0xff] }
  0x17   :  { %868 = vmatpush3.bf16.msra.mxu0 %v931_v15  ;;  %920 = vmatpush3.bf16.msra.mxu1 %v931_v15  ;;  %v45_v29 = vld [vmem:[%s1223_s0 + $0xb8] sm:$0xff]  ;;  %v46_v30 = vld [vmem:[%s1223_s0 + $0xc0] sm:$0xff]  ;;  %v47_v31 = vld [vmem:[%s1223_s0 + $0xc8] sm:$0xff] }
  0x18   :  { %829 = vmatmul.mubr.msk.f32.gmra.mxu0 %vm62_vm0, %v33_v16  ;;  %869 = vmatprep.subr.bf16.mxu0 %v932_v18  ;;  %v48_v32 = vld [vmem:[%s1223_s0 + $0xd0] sm:$0xff]  ;;  %v49_v33 = vld [vmem:[%s1223_s0 + $0xd8] sm:$0xff]  ;;  %v50_v34 = vld [vmem:[%s1223_s0 + $0xe0] sm:$0xff] }
  0x19   :  { %831 = vmatprep.mubr.msk.f32.mxu0 %vm62_vm0, %v34_v17  ;;  %913 = vmatprep.subr.bf16.mxu1 %v932_v18  ;;  %v51_v35 = vld [vmem:[%s1223_s0 + $0xe8] sm:$0xff]  ;;  %v52_v36 = vld [vmem:[%s1223_s0 + $0xf0] sm:$0xff]  ;;  %v53_v37 = vld [vmem:[%s1223_s0 + $0xf8] sm:$0xff] }
  0x1a   :  { %v933_v38 = vld [vmem:[%s1226_s3 + $0x10] sm:$0xff]   ;;  %v934_v39 = vld [vmem:[%s1226_s3 + $0x8] sm:$0xff]   ;;  %v935_v40 = vld [vmem:[%s1226_s3] sm:$0xff]  }
  0x1b   :  { %870 = vmatpush3.bf16.msra.mxu0 %v932_v18  ;;  %921 = vmatpush3.bf16.msra.mxu1 %v932_v18  ;;  %v1149_v41 = vld [vmem:[%s1225_s2] ss:$0 sm:$0xff] }
  0x1c   :  { %832 = vmatmul.mubr.msk.f32.gmra.mxu0 %vm62_vm0, %v35_v19  ;;  %871 = vmatprep.subr.bf16.mxu0 %v933_v38 }
  0x1d   :  { %834 = vmatprep.mubr.msk.f32.mxu0 %vm62_vm0, %v36_v20  ;;  %914 = vmatprep.subr.bf16.mxu1 %v933_v38 }
  0x1f   :  { %872 = vmatpush3.bf16.msra.mxu0 %v933_v38  ;;  %922 = vmatpush3.bf16.msra.mxu1 %v933_v38 }
  0x20   :  { %835 = vmatmul.mubr.msk.f32.gmra.mxu0 %vm62_vm0, %v37_v21  ;;  %873 = vmatprep.subr.bf16.mxu0 %v934_v39 }
  0x21   :  { %837 = vmatprep.mubr.msk.f32.mxu0 %vm62_vm0, %v38_v22  ;;  %915 = vmatprep.subr.bf16.mxu1 %v934_v39 }
  0x23   :  { %874 = vmatpush3.bf16.msra.mxu0 %v934_v39  ;;  %923 = vmatpush3.bf16.msra.mxu1 %v934_v39 }
  0x24   :  { %838 = vmatmul.mubr.msk.f32.gmra.mxu0 %vm62_vm0, %v39_v23  ;;  %875 = vmatprep.subr.bf16.mxu0 %v935_v40 }
  0x25   :  { %840 = vmatprep.mubr.msk.f32.mxu0 %vm62_vm0, %v40_v24  ;;  %916 = vmatprep.subr.bf16.mxu1 %v935_v40 }
  0x27   :  { %876 = vmatpush3.bf16.msra.mxu0 %v935_v40  ;;  %924 = vmatpush3.bf16.msra.mxu1 %v935_v40 }
  0x28   :  { %841 = vmatmul.mubr.msk.f32.gmra.mxu0 %vm62_vm0, %v41_v25 }
  0x29   :  { %843 = vmatprep.mubr.msk.f32.mxu0 %vm62_vm0, %v42_v26 }
  0x2c   :  { %844 = vmatmul.mubr.msk.f32.gmra.mxu0 %vm62_vm0, %v43_v27 }
  0x2d   :  { %846 = vmatprep.mubr.msk.f32.mxu0 %vm62_vm0, %v44_v28 }
  0x30   :  { %847 = vmatmul.mubr.msk.f32.gmra.mxu0 %vm62_vm0, %v45_v29 }
  0x31   :  { %849 = vmatprep.mubr.msk.f32.mxu0 %vm62_vm0, %v46_v30 }
  0x34   :  { %850 = vmatmul.mubr.msk.f32.gmra.mxu0 %vm62_vm0, %v47_v31 }
  0x35   :  { %852 = vmatprep.mubr.msk.f32.mxu0 %vm62_vm0, %v48_v32 }
  0x38   :  { %853 = vmatmul.mubr.msk.f32.gmra.mxu0 %vm62_vm0, %v49_v33 }
  0x39   :  { %855 = vmatprep.mubr.msk.f32.mxu0 %vm62_vm0, %v50_v34 }
  0x3c   :  { %856 = vmatmul.mubr.msk.f32.gmra.mxu0 %vm62_vm0, %v51_v35 }
  0x3d   :  { %858 = vmatprep.mubr.msk.f32.mxu0 %vm62_vm0, %v52_v36 }
  0x40   :  { %859 = vmatmul.mubr.msk.f32.gmra.mxu0 %vm62_vm0, %v53_v37 }
  0xc4   :  { %v815_v42 = vpop.f32.mrf.mxu0 }
  0xc5   :  { %v231_v43 = vadd.f32 %v815_v42, %v1149_v41 }
  0xc6   :  { %v225_v44 = vpop.f32.mrf.mxu0 }
  0xc7   :  { %v226_v45 = vadd.f32 %v1149_v41, %v225_v44  ;;  %v385_v47 = vmax.f32 %v231_v43, 0.0 }
  0xc8   :  { %v818_v46 = vpop.f32.mrf.mxu0 }
  0xc9   :  { %v384_v48 = vmax.f32 %v226_v45, 0.0  ;;  %v241_v49 = vadd.f32 %v818_v46, %v1149_v41 }
  0xca   :  { %v235_v50 = vpop.f32.mrf.mxu0 }
  0xcb   :  { %v416_v51 = vpack.c.bf16 %v385_v47, %v384_v48  ;;  %v236_v52 = vadd.f32 %v1149_v41, %v235_v50  ;;  %v387_v54 = vmax.f32 %v241_v49, 0.0 }
  0xcc   :  { %v821_v53 = vpop.f32.mrf.mxu0 }
  0xcd   :  { %v386_v55 = vmax.f32 %v236_v52, 0.0  ;;  %v251_v56 = vadd.f32 %v821_v53, %v1149_v41  ;;  %877 = vmatprep.mubr.bf16.mxu0 %v416_v51 }
  0xce   :  { %v245_v57 = vpop.f32.mrf.mxu0 }
  0xcf   :  { %v417_v58 = vpack.c.bf16 %v387_v54, %v386_v55  ;;  %v246_v59 = vadd.f32 %v1149_v41, %v245_v57  ;;  %v389_v61 = vmax.f32 %v251_v56, 0.0 }
  0xd0   :  { %v824_v60 = vpop.f32.mrf.mxu0 }
  0xd1   :  { %v388_v62 = vmax.f32 %v246_v59, 0.0  ;;  %v261_v63 = vadd.f32 %v824_v60, %v1149_v41  ;;  %878 = vmatmul.mubr.bf16.vlgmr.msra.gmra.mxu0 %v417_v58 }
  0xd2   :  { %v255_v0 = vpop.f32.mrf.mxu0 }
  0xd3   :  { %v256_v1 = vadd.f32 %v1149_v41, %v255_v0  ;;  %v418_v2 = vpack.c.bf16 %v389_v61, %v388_v62  ;;  %v391_v4 = vmax.f32 %v261_v63, 0.0 }
  0xd4   :  { %v827_v3 = vpop.f32.mrf.mxu0 }
  0xd5   :  { %v390_v5 = vmax.f32 %v256_v1, 0.0  ;;  %v271_v6 = vadd.f32 %v827_v3, %v1149_v41  ;;  %881 = vmatprep.mubr.bf16.mxu1 %v418_v2 }
  0xd6   :  { %v265_v7 = vpop.f32.mrf.mxu0 }
  0xd7   :  { %v419_v8 = vpack.c.bf16 %v391_v4, %v390_v5  ;;  %v266_v9 = vadd.f32 %v1149_v41, %v265_v7  ;;  %v393_v11 = vmax.f32 %v271_v6, 0.0 }
  0xd8   :  { %v830_v10 = vpop.f32.mrf.mxu0 }
  0xd9   :  { %v392_v12 = vmax.f32 %v266_v9, 0.0  ;;  %v281_v13 = vadd.f32 %v830_v10, %v1149_v41  ;;  %882 = vmatmul.mubr.bf16.vlgmr.msra.gmra.mxu1 %v419_v8 }
  0xda   :  { %v275_v14 = vpop.f32.mrf.mxu0 }
  0xdb   :  { %v420_v15 = vpack.c.bf16 %v393_v11, %v392_v12  ;;  %v276_v16 = vadd.f32 %v1149_v41, %v275_v14  ;;  %v395_v18 = vmax.f32 %v281_v13, 0.0 }
  0xdc   :  { %v833_v17 = vpop.f32.mrf.mxu0 }
  0xdd   :  { %v394_v19 = vmax.f32 %v276_v16, 0.0  ;;  %v291_v20 = vadd.f32 %v833_v17, %v1149_v41  ;;  %885 = vmatprep.mubr.bf16.mxu1 %v420_v15 }
  0xde   :  { %v285_v21 = vpop.f32.mrf.mxu0 }
  0xdf   :  { %v421_v22 = vpack.c.bf16 %v395_v18, %v394_v19  ;;  %v286_v23 = vadd.f32 %v1149_v41, %v285_v21  ;;  %v397_v25 = vmax.f32 %v291_v20, 0.0 }
  0xe0   :  { %v836_v24 = vpop.f32.mrf.mxu0 }
  0xe1   :  { %v396_v26 = vmax.f32 %v286_v23, 0.0  ;;  %v301_v27 = vadd.f32 %v836_v24, %v1149_v41  ;;  %886 = vmatmul.mubr.bf16.gmra.mxu1 %v421_v22 }
  0xe2   :  { %v295_v28 = vpop.f32.mrf.mxu0 }
  0xe3   :  { %v422_v29 = vpack.c.bf16 %v397_v25, %v396_v26  ;;  %v296_v30 = vadd.f32 %v1149_v41, %v295_v28  ;;  %v399_v32 = vmax.f32 %v301_v27, 0.0  ;;  %v1186_v27 = vld [vmem:[%s1227_s4] ss:$0 sm:$0xff]  ;;  %s958_s4 = smov [#allocation2]  }
  0xe4   :  { %v839_v31 = vpop.f32.mrf.mxu0  ;;  %s701_s23 = sshll.u32 %s958_s4, 4  ;;  %s702_s23 = int_to_ptr.vmem [resolvable:$true] %s701_s23 }
  0xe5   :  { %v398_v33 = vmax.f32 %v296_v30, 0.0  ;;  %v311_v34 = vadd.f32 %v839_v31, %v1149_v41  ;;  %889 = vmatprep.mubr.bf16.mxu1 %v422_v29  ;;  %s936_s24 = scalar_lea.vmem %s702_s23, 4096  ;;  %p941_p1 = scmp.lt.s32.totalorder %s702_s23, %s702_s23 }
  0xe6   :  { %v305_v35 = vpop.f32.mrf.mxu0  ;;  %p937_p0 = scmp.ne.s32.totalorder %s702_s23, %s936_s24  ;;  %p942_p2 = scmp.lt.s32.totalorder %s936_s24, %s936_s24 }
  0xe7   :  { %v423_v36 = vpack.c.bf16 %v399_v32, %v398_v33  ;;  %v306_v37 = vadd.f32 %v1149_v41, %v305_v35  ;;  %v401_v39 = vmax.f32 %v311_v34, 0.0 }
  0xe8   :  { %v842_v38 = vpop.f32.mrf.mxu0  ;;  %p943_p3 = por %p942_p2, %p941_p1 }
  0xe9   :  { %v400_v40 = vmax.f32 %v306_v37, 0.0  ;;  %v321_v42 = vadd.f32 %v842_v38, %v1149_v41  ;;  %890 = vmatmul.mubr.bf16.gmra.mxu1 %v423_v36 }
  0xea   :  { %v315_v43 = vpop.f32.mrf.mxu0  ;;  %p944_p4 = pnand %p943_p3, %p937_p0 }
  0xeb   :  { %v424_v44 = vpack.c.bf16 %v401_v39, %v400_v40  ;;  %v316_v45 = vadd.f32 %v1149_v41, %v315_v43  ;;  %v403_v47 = vmax.f32 %v321_v42, 0.0 }
  0xec   :  { %v845_v46 = vpop.f32.mrf.mxu0 }
  0xed   :  { %v402_v48 = vmax.f32 %v316_v45, 0.0  ;;  %v331_v49 = vadd.f32 %v845_v46, %v1149_v41  ;;  %893 = vmatprep.mubr.bf16.mxu1 %v424_v44 }
  0xee   :  { %v325_v50 = vpop.f32.mrf.mxu0 }
  0xef   :  { %v425_v51 = vpack.c.bf16 %v403_v47, %v402_v48  ;;  %v326_v52 = vadd.f32 %v1149_v41, %v325_v50  ;;  %v405_v54 = vmax.f32 %v331_v49, 0.0 }
  0xf0   :  { %v848_v53 = vpop.f32.mrf.mxu0 }
  0xf1   :  { %v404_v55 = vmax.f32 %v326_v52, 0.0  ;;  %v341_v56 = vadd.f32 %v848_v53, %v1149_v41  ;;  %894 = vmatmul.mubr.bf16.gmra.mxu1 %v425_v51 }
  0xf2   :  { %v335_v57 = vpop.f32.mrf.mxu0 }
  0xf3   :  { %v426_v58 = vpack.c.bf16 %v405_v54, %v404_v55  ;;  %v336_v59 = vadd.f32 %v1149_v41, %v335_v57  ;;  %v407_v61 = vmax.f32 %v341_v56, 0.0 }
  0xf4   :  { %v851_v60 = vpop.f32.mrf.mxu0 }
  0xf5   :  { %v406_v62 = vmax.f32 %v336_v59, 0.0  ;;  %v351_v63 = vadd.f32 %v851_v60, %v1149_v41  ;;  %897 = vmatprep.mubr.bf16.mxu1 %v426_v58 }
  0xf6   :  { %v345_v0 = vpop.f32.mrf.mxu0 }
  0xf7   :  { %v427_v1 = vpack.c.bf16 %v407_v61, %v406_v62  ;;  %v346_v2 = vadd.f32 %v1149_v41, %v345_v0  ;;  %v409_v4 = vmax.f32 %v351_v63, 0.0 }
  0xf8   :  { %v854_v3 = vpop.f32.mrf.mxu0 }
  0xf9   :  { %v408_v5 = vmax.f32 %v346_v2, 0.0  ;;  %v361_v6 = vadd.f32 %v854_v3, %v1149_v41  ;;  %898 = vmatmul.mubr.bf16.gmra.mxu1 %v427_v1 }
  0xfa   :  { %v355_v7 = vpop.f32.mrf.mxu0 }
  0xfb   :  { %v428_v8 = vpack.c.bf16 %v409_v4, %v408_v5  ;;  %v356_v9 = vadd.f32 %v1149_v41, %v355_v7  ;;  %v411_v11 = vmax.f32 %v361_v6, 0.0 }
  0xfc   :  { %v857_v10 = vpop.f32.mrf.mxu0 }
  0xfd   :  { %v410_v12 = vmax.f32 %v356_v9, 0.0  ;;  %v371_v13 = vadd.f32 %v857_v10, %v1149_v41  ;;  %901 = vmatprep.mubr.bf16.mxu1 %v428_v8 }
  0xfe   :  { %v365_v14 = vpop.f32.mrf.mxu0 }
  0xff   :  { %v429_v15 = vpack.c.bf16 %v411_v11, %v410_v12  ;;  %v366_v16 = vadd.f32 %v1149_v41, %v365_v14  ;;  %v413_v18 = vmax.f32 %v371_v13, 0.0 }
 0x100   :  { %v860_v17 = vpop.f32.mrf.mxu0 }
 0x101   :  { %v412_v19 = vmax.f32 %v366_v16, 0.0  ;;  %v381_v20 = vadd.f32 %v860_v17, %v1149_v41  ;;  %902 = vmatmul.mubr.bf16.gmra.mxu1 %v429_v15 }
 0x102   :  { %v375_v21 = vpop.f32.mrf.mxu0 }
 0x103   :  { %v430_v22 = vpack.c.bf16 %v413_v18, %v412_v19  ;;  %v376_v23 = vadd.f32 %v1149_v41, %v375_v21  ;;  %v415_v24 = vmax.f32 %v381_v20, 0.0 }
 0x105   :  { %v414_v25 = vmax.f32 %v376_v23, 0.0  ;;  %905 = vmatprep.mubr.bf16.mxu1 %v430_v22 }
 0x107   :  { %v431_v26 = vpack.c.bf16 %v415_v24, %v414_v25 }
 0x109   :  { %906 = vmatmul.mubr.bf16.gmra.mxu1 %v431_v26 }
 0x191   :  { %v879_v28 = vpop.f32.mrf.mxu0 }
 0x192   :  { %v546_v29 = vadd.f32 %v879_v28, %v1186_v27 }
 0x193   :  { %v537_v30 = vpop.f32.mrf.mxu0 }
 0x194   :  { %666 = vst [vmem:[#allocation2 + $0x10] sm:$0xff] %v546_v29  ;;  %v538_v31 = vadd.f32 %v1186_v27, %v537_v30 }
 0x195   :  { %v880_v32 = vpop.f32.mrf.mxu0 }
 0x196   :  { %664 = vst [vmem:[#allocation2] sm:$0xff] %v538_v31  ;;  %v549_v41 = vadd.f32 %v880_v32, %v1186_v27 }
 0x197   :  { %v540_v33 = vpop.f32.mrf.mxu0 }
 0x198   :  { %667 = vst [vmem:[#allocation2 + $0x18] sm:$0xff] %v549_v41  ;;  %v541_v34 = vadd.f32 %v1186_v27, %v540_v33 }
 0x199   :  { %v883_v35 = vpop.f32.mrf.mxu1 }
 0x19a   :  { %665 = vst [vmem:[#allocation2 + $0x8] sm:$0xff] %v541_v34  ;;  %v562_v36 = vadd.f32 %v883_v35, %v1186_v27 }
 0x19b   :  { %v553_v37 = vpop.f32.mrf.mxu1 }
 0x19c   :  { %670 = vst [vmem:[#allocation2 + $0x30] sm:$0xff] %v562_v36  ;;  %v554_v38 = vadd.f32 %v1186_v27, %v553_v37 }
 0x19d   :  { %v884_v39 = vpop.f32.mrf.mxu1 }
 0x19e   :  { %668 = vst [vmem:[#allocation2 + $0x20] sm:$0xff] %v554_v38  ;;  %v565_v40 = vadd.f32 %v884_v39, %v1186_v27 }
 0x19f   :  { %v556_v42 = vpop.f32.mrf.mxu1 }
 0x1a0   :  { %671 = vst [vmem:[#allocation2 + $0x38] sm:$0xff] %v565_v40  ;;  %v557_v43 = vadd.f32 %v1186_v27, %v556_v42 }
 0x1a1   :  { %v887_v44 = vpop.f32.mrf.mxu1 }
 0x1a2   :  { %669 = vst [vmem:[#allocation2 + $0x28] sm:$0xff] %v557_v43  ;;  %v578_v45 = vadd.f32 %v887_v44, %v1186_v27 }
 0x1a3   :  { %v569_v46 = vpop.f32.mrf.mxu1 }
 0x1a4   :  { %674 = vst [vmem:[#allocation2 + $0x50] sm:$0xff] %v578_v45  ;;  %v570_v47 = vadd.f32 %v1186_v27, %v569_v46 }
 0x1a5   :  { %v888_v48 = vpop.f32.mrf.mxu1 }
 0x1a6   :  { %672 = vst [vmem:[#allocation2 + $0x40] sm:$0xff] %v570_v47  ;;  %v581_v49 = vadd.f32 %v888_v48, %v1186_v27 }
 0x1a7   :  { %v572_v50 = vpop.f32.mrf.mxu1 }
 0x1a8   :  { %675 = vst [vmem:[#allocation2 + $0x58] sm:$0xff] %v581_v49  ;;  %v573_v51 = vadd.f32 %v1186_v27, %v572_v50 }
 0x1a9   :  { %v891_v52 = vpop.f32.mrf.mxu1 }
 0x1aa   :  { %673 = vst [vmem:[#allocation2 + $0x48] sm:$0xff] %v573_v51  ;;  %v594_v53 = vadd.f32 %v891_v52, %v1186_v27 }
 0x1ab   :  { %v585_v54 = vpop.f32.mrf.mxu1 }
 0x1ac   :  { %678 = vst [vmem:[#allocation2 + $0x70] sm:$0xff] %v594_v53  ;;  %v586_v55 = vadd.f32 %v1186_v27, %v585_v54 }
 0x1ad   :  { %v892_v56 = vpop.f32.mrf.mxu1 }
 0x1ae   :  { %676 = vst [vmem:[#allocation2 + $0x60] sm:$0xff] %v586_v55  ;;  %v597_v57 = vadd.f32 %v892_v56, %v1186_v27 }
 0x1af   :  { %v588_v58 = vpop.f32.mrf.mxu1 }
 0x1b0   :  { %679 = vst [vmem:[#allocation2 + $0x78] sm:$0xff] %v597_v57  ;;  %v589_v59 = vadd.f32 %v1186_v27, %v588_v58 }
 0x1b1   :  { %v895_v60 = vpop.f32.mrf.mxu1 }
 0x1b2   :  { %677 = vst [vmem:[#allocation2 + $0x68] sm:$0xff] %v589_v59  ;;  %v610_v61 = vadd.f32 %v895_v60, %v1186_v27 }
 0x1b3   :  { %v601_v62 = vpop.f32.mrf.mxu1 }
 0x1b4   :  { %682 = vst [vmem:[#allocation2 + $0x90] sm:$0xff] %v610_v61  ;;  %v602_v63 = vadd.f32 %v1186_v27, %v601_v62 }
 0x1b5   :  { %v896_v0 = vpop.f32.mrf.mxu1 }
 0x1b6   :  { %680 = vst [vmem:[#allocation2 + $0x80] sm:$0xff] %v602_v63  ;;  %v613_v1 = vadd.f32 %v896_v0, %v1186_v27 }
 0x1b7   :  { %v604_v2 = vpop.f32.mrf.mxu1 }
 0x1b8   :  { %683 = vst [vmem:[#allocation2 + $0x98] sm:$0xff] %v613_v1  ;;  %v605_v3 = vadd.f32 %v1186_v27, %v604_v2 }
 0x1b9   :  { %v899_v4 = vpop.f32.mrf.mxu1 }
 0x1ba   :  { %681 = vst [vmem:[#allocation2 + $0x88] sm:$0xff] %v605_v3  ;;  %v626_v5 = vadd.f32 %v899_v4, %v1186_v27 }
 0x1bb   :  { %v617_v6 = vpop.f32.mrf.mxu1 }
 0x1bc   :  { %686 = vst [vmem:[#allocation2 + $0xb0] sm:$0xff] %v626_v5  ;;  %v618_v7 = vadd.f32 %v1186_v27, %v617_v6 }
 0x1bd   :  { %v900_v8 = vpop.f32.mrf.mxu1 }
 0x1be   :  { %684 = vst [vmem:[#allocation2 + $0xa0] sm:$0xff] %v618_v7  ;;  %v629_v9 = vadd.f32 %v900_v8, %v1186_v27 }
 0x1bf   :  { %v620_v10 = vpop.f32.mrf.mxu1 }
 0x1c0   :  { %687 = vst [vmem:[#allocation2 + $0xb8] sm:$0xff] %v629_v9  ;;  %v621_v11 = vadd.f32 %v1186_v27, %v620_v10 }
 0x1c1   :  { %v903_v12 = vpop.f32.mrf.mxu1 }
 0x1c2   :  { %685 = vst [vmem:[#allocation2 + $0xa8] sm:$0xff] %v621_v11  ;;  %v642_v13 = vadd.f32 %v903_v12, %v1186_v27 }
 0x1c3   :  { %v633_v14 = vpop.f32.mrf.mxu1 }
 0x1c4   :  { %690 = vst [vmem:[#allocation2 + $0xd0] sm:$0xff] %v642_v13  ;;  %v634_v15 = vadd.f32 %v1186_v27, %v633_v14 }
 0x1c5   :  { %v904_v16 = vpop.f32.mrf.mxu1 }
 0x1c6   :  { %688 = vst [vmem:[#allocation2 + $0xc0] sm:$0xff] %v634_v15  ;;  %v645_v17 = vadd.f32 %v904_v16, %v1186_v27 }
 0x1c7   :  { %v636_v18 = vpop.f32.mrf.mxu1 }
 0x1c8   :  { %691 = vst [vmem:[#allocation2 + $0xd8] sm:$0xff] %v645_v17  ;;  %v637_v19 = vadd.f32 %v1186_v27, %v636_v18 }
 0x1c9   :  { %v907_v20 = vpop.f32.mrf.mxu1 }
 0x1ca   :  { %689 = vst [vmem:[#allocation2 + $0xc8] sm:$0xff] %v637_v19  ;;  %v658_v21 = vadd.f32 %v907_v20, %v1186_v27 }
 0x1cb   :  { %v649_v22 = vpop.f32.mrf.mxu1 }
 0x1cc   :  { %694 = vst [vmem:[#allocation2 + $0xf0] sm:$0xff] %v658_v21  ;;  %v650_v23 = vadd.f32 %v1186_v27, %v649_v22 }
 0x1cd   :  { %v908_v24 = vpop.f32.mrf.mxu1 }
 0x1ce   :  { %692 = vst [vmem:[#allocation2 + $0xe0] sm:$0xff] %v650_v23  ;;  %v661_v25 = vadd.f32 %v908_v24, %v1186_v27 }
 0x1cf   :  { %v652_v26 = vpop.f32.mrf.mxu1 }
 0x1d0   :  { %695 = vst [vmem:[#allocation2 + $0xf8] sm:$0xff] %v661_v25  ;;  %v653_v28 = vadd.f32 %v1186_v27, %v652_v26 }
 0x1d2   :  { %693 = vst [vmem:[#allocation2 + $0xe8] sm:$0xff] %v653_v28 }
 0x1d3   :  { %947 = shalt.err (!%p944_p4)
}
 0x1d4   :  { %s959_s25 = smov 128   ;;  %s960_s1 = smov 8  }
 0x1d5   :  { %707 = dma.vmem_to_hbm [thread:$0]  %s702_s23, 4096, %s1228_s5, [#allocation3], %s959_s25, %s959_s25, %s960_s1  }
 0x1d6   :  { %956 = dma.done.wait [#allocation3], 4096  }
 0x1d7   :  { %957 = vsyncadd [#allocation3], 4294963200 }
 0x1d8   :  { %711 = vsyncpa [#allocation3], 1 }

</bundles_post_ra>
